<compile_context>
chip_gen: v5e
topology: v5e:2x2
jax: 0.10.0
libtpu: 0.0.40
codegen_flags: <defaults>
</compile_context>

<pallas_src>
import functools

import jax
import jax.numpy as jnp
from jax.experimental import pallas as pl
from jax.experimental.pallas import tpu as pltpu

HIDDEN = 32
NUM_HEADS = 4


def attn_disc_kernel(x_ref, wbig_ref, consts_ref, out_ref, *, num_heads):
    nh = num_heads
    TB, N, H = x_ref.shape

    # (TB, N, H) -> (TB*N, H): tile-preserving merge of the leading dims.
    xf = x_ref[...].reshape(TB * N, H)

    # Packed resident constants.
    b_big = consts_ref[0:1, 0:2 * nh]            # (1, 2nh) bias for the matmul
    s_c = consts_ref[1:2, 0:nh]                  # (1, nh)  cls-key logit / head
    t_c = consts_ref[2:3, 0:nh]                  # (1, nh)  cls-key value term
    b_f = consts_ref[3:4, 0:1]                   # (1, 1)   fused output bias

    # One fused MXU matmul for logits and value terms (f32 accumulation).
    st = jnp.dot(xf, wbig_ref[...], preferred_element_type=jnp.float32) + b_big
    st = st.reshape(TB, N, 2 * nh)
    s_x = st[:, :, :nh]                          # (TB, N, nh) attention logits
    t_x = st[:, :, nh:]                          # (TB, N, nh) value terms

    # Numerically-stable softmax over the N sequence keys + the cls key,
    # vectorized over the TB batch elements of this block.
    m = jnp.maximum(jnp.max(s_x, axis=1, keepdims=True), s_c)     # (TB, 1, nh)
    e_x = jnp.exp(s_x - m)                                        # (TB, N, nh)
    e_c = jnp.exp(s_c - m)                                        # (TB, 1, nh)
    denom = e_c + jnp.sum(e_x, axis=1, keepdims=True)             # (TB, 1, nh)
    num = e_c * t_c + jnp.sum(e_x * t_x, axis=1, keepdims=True)   # (TB, 1, nh)

    inv = pl.reciprocal(denom, approx=False)     # exact EUP reciprocal
    y = jnp.sum(num * inv, axis=-1) + b_f        # (TB, 1)

    # Lane-dense writeback: one unmasked 128-lane row per batch element.
    out_ref[...] = jnp.broadcast_to(y.reshape(1, TB, 1), out_ref.shape)


def _choose_tb(B, N, H, itemsize, max_block_bytes=4 * 1024 * 1024):
    """Batch-tile size: big contiguous DMAs, but keep >=2 grid steps (v7x)
    and a double-buffered x block far below the v7x 64 MiB VMEM."""
    per_batch = max(1, N * H * itemsize)
    tb = max(1, min(B, max_block_bytes // per_batch))
    if B >= 2:
        tb = min(tb, pl.cdiv(B, 2))
    return int(max(1, tb))


def attention_discriminator(x, params, *, num_heads=NUM_HEADS,
                            compute_dtype=jnp.bfloat16, tb=None):
    B, N, H = x.shape
    nh = num_heads
    d = H // nh
    scale = d ** -0.5
    f32 = jnp.float32

    qkv_w = params["qkv_w"].astype(f32)          # (3H, H)
    qkv_b = params["qkv_b"].astype(f32)          # (3H,)
    proj_w = params["proj_w"].astype(f32)        # (H, H)
    proj_b = params["proj_b"].astype(f32)        # (H,)
    cls_w = params["cls_w"].astype(f32)          # (1, H)
    cls_b = params["cls_b"].astype(f32)          # (1,)
    cls_tok = params["cls_token"].reshape(1, H).astype(f32)

    head_id = jnp.arange(H) // d
    rhead = (head_id[:, None] == jnp.arange(nh)[None, :]).astype(f32)  # (H, nh)

    # ---- batch-independent cls-token path, hoisted out of the kernel ----
    qkv_c = cls_tok @ qkv_w.T + qkv_b[None, :]                         # (1, 3H)
    q_c = qkv_c[:, :H] * scale                                         # (1, H)
    k_c = qkv_c[:, H:2 * H]
    v_c = qkv_c[:, 2 * H:]
    s_c = (q_c * k_c) @ rhead                                          # (1, nh)

    # ---- fold K projection + cls-query scaling + per-head reduce ----
    wk_t = qkv_w[H:2 * H, :].T                                         # (H, H)
    bk = qkv_b[H:2 * H][None, :]                                       # (1, H)
    w_logit = (wk_t * q_c) @ rhead                                     # (H, nh)
    b_logit = (bk * q_c) @ rhead                                       # (1, nh)

    # ---- fuse out-proj + classifier, then fold that row through V ----
    wf_row = (proj_w.T @ cls_w.T).T                                    # (1, H)
    b_fused = proj_b[None, :] @ cls_w.T + cls_b[None, :]               # (1, 1)
    w_p = wf_row.T * rhead                                             # (H, nh)
    wv_t = qkv_w[2 * H:, :].T                                          # (H, H)
    bv = qkv_b[2 * H:][None, :]                                        # (1, H)
    w_val = wv_t @ w_p                                                 # (H, nh)
    b_val = bv @ w_p                                                   # (1, nh)
    t_c = v_c @ w_p                                                    # (1, nh)

    w_big = jnp.concatenate([w_logit, w_val], axis=1)                  # (H, 2nh)
    b_big = jnp.concatenate([b_logit, b_val], axis=1)                  # (1, 2nh)

    # Pack every remaining tiny f32 constant into one lane-padded slab.
    consts = jnp.zeros((8, 128), f32)
    consts = consts.at[0, :2 * nh].set(b_big[0])
    consts = consts.at[1, :nh].set(s_c[0])
    consts = consts.at[2, :nh].set(t_c[0])
    consts = consts.at[3, 0].set(b_fused[0, 0])

    # ---- batch tiling ----
    itemsize = jnp.dtype(compute_dtype).itemsize
    if tb is None:
        tb = _choose_tb(B, N, H, itemsize)
    steps = pl.cdiv(B, tb)
    b_pad = steps * tb

    x_in = x.astype(compute_dtype)
    if b_pad != B:
        x_in = jnp.pad(x_in, ((0, b_pad - B), (0, 0), (0, 0)))

    kernel = functools.partial(attn_disc_kernel, num_heads=nh)

    out = pl.pallas_call(
        kernel,
        out_shape=jax.ShapeDtypeStruct((steps, tb, 128), f32),
        grid=(steps,),
        in_specs=[
            # x: the only large operand, auto double-buffered per grid step.
            pl.BlockSpec((tb, N, H), lambda i: (i, 0, 0)),
            # Fused weight: constant block index -> stays resident in VMEM.
            pl.BlockSpec((H, 2 * nh), lambda i: (0, 0)),
            # Packed constants slab, resident.
            pl.BlockSpec((8, 128), lambda i: (0, 0)),
        ],
        out_specs=pl.BlockSpec((1, tb, 128), lambda i: (i, 0, 0)),
        compiler_params=pltpu.CompilerParams(
            dimension_semantics=("parallel",),
            vmem_limit_bytes=32 * 1024 * 1024,
        ),
    )(x_in, w_big.astype(compute_dtype), consts)

    return out.reshape(b_pad, 128)[:B, 0]


def reference(x, params):
    """Pure-JAX reference mirroring the PyTorch module exactly."""
    B, N, H = x.shape
    nh, d = NUM_HEADS, H // NUM_HEADS
    cls = jnp.broadcast_to(params["cls_token"], (B, 1, H))
    xs = jnp.concatenate([cls, x], axis=1)                       # (B, S, H)
    qkv = xs @ params["qkv_w"].T + params["qkv_b"]               # (B, S, 3H)
    qkv = qkv.reshape(B, N + 1, 3, nh, d).transpose(2, 0, 3, 1, 4)
    q, k, v = qkv[0], qkv[1], qkv[2]                             # (B, nh, S, d)
    q = q * (d ** -0.5)
    attn = jnp.einsum("bhqd,bhkd->bhqk", q, k)
    attn = jax.nn.softmax(attn, axis=-1)
    o = jnp.einsum("bhqk,bhkd->bhqd", attn, v)
    o = o.transpose(0, 2, 1, 3).reshape(B, N + 1, H)
    o = o @ params["proj_w"].T + params["proj_b"]
    z = o[:, 0, :]
    y = z @ params["cls_w"].T + params["cls_b"]
    return y[:, 0]


if __name__ == "__main__":
    H = HIDDEN
    N = 8
    key = jax.random.PRNGKey(0)
    ks = jax.random.split(key, 9)
    params = {
        "cls_token": jax.random.normal(ks[0], (1, 1, H), jnp.float32),
        "qkv_w": jax.random.normal(ks[1], (3 * H, H), jnp.float32) * 0.1,
        "qkv_b": jax.random.normal(ks[2], (3 * H,), jnp.float32) * 0.1,
        "proj_w": jax.random.normal(ks[3], (H, H), jnp.float32) * 0.1,
        "proj_b": jax.random.normal(ks[4], (H,), jnp.float32) * 0.1,
        "cls_w": jax.random.normal(ks[5], (1, H), jnp.float32) * 0.1,
        "cls_b": jax.random.normal(ks[6], (1,), jnp.float32) * 0.1,
    }

    # Primary small case (B=2): one batch per step, two grid steps.
    x2 = jax.random.normal(ks[7], (2, N, H), jnp.float32)
    # Secondary case (B=5): TB>1 block + batch padding path.
    x5 = jax.random.normal(ks[8], (5, N, H), jnp.float32)

    for x in (x2, x5):
        y_ref = reference(x, params)

        # Exact f32 path.
        y32 = jax.block_until_ready(
            attention_discriminator(x, params, compute_dtype=jnp.float32))
        assert y32.shape == (x.shape[0],), y32.shape
        assert jnp.allclose(y32, y_ref, atol=1e-4, rtol=1e-4), (y32, y_ref)

        # Default bf16 path (halves HBM bytes); f32 accumulation in-kernel.
        ybf = jax.block_until_ready(attention_discriminator(x, params))
        assert ybf.shape == (x.shape[0],), ybf.shape
        assert jnp.allclose(ybf, y_ref, atol=3e-2, rtol=3e-2), (ybf, y_ref)

    print("KERNEL_OK")
</pallas_src>

<mosaic_0001>
module attributes {stable_mosaic.version = 11 : i64} {
  func.func @attn_disc_kernel(%arg0: i32, %arg1: memref<1x8x32xf32, #tpu.memory_space<vmem>>, %arg2: memref<32x8xf32, #tpu.memory_space<vmem>>, %arg3: memref<8x128xf32, #tpu.memory_space<vmem>>, %arg4: memref<1x1x128xf32, #tpu.memory_space<vmem>>) attributes {dimension_semantics = [#tpu.dimension_semantics<parallel>], iteration_bounds = array<i64: 2>, scalar_prefetch = 0 : i64, scratch_operands = 0 : i64, tpu.core_type = #tpu.core_type<tc>, window_params = [{transform_indices = @transform_0, window_bounds = array<i64: 1, 8, 32>}, {pipeline_mode = #tpu.pipeline_mode<synchronous>, transform_indices = @transform_1, window_bounds = array<i64: 32, 8>}, {pipeline_mode = #tpu.pipeline_mode<synchronous>, transform_indices = @transform_2, window_bounds = array<i64: 8, 128>}, {transform_indices = @transform_3, window_bounds = array<i64: 1, 1, 128>}]} {
    %c0 = arith.constant 0 : index
    %c0_0 = arith.constant 0 : index
    %c0_1 = arith.constant 0 : index
    %0 = vector.load %arg1[%c0, %c0_0, %c0_1] : memref<1x8x32xf32, #tpu.memory_space<vmem>>, vector<1x8x32xf32>
    %1 = vector.shape_cast %0 : vector<1x8x32xf32> to vector<8x32xf32>
    %c0_2 = arith.constant 0 : index
    %c0_3 = arith.constant 0 : index
    %2 = vector.load %arg3[%c0_2, %c0_3] : memref<8x128xf32, #tpu.memory_space<vmem>>, vector<1x8xf32>
    %c1 = arith.constant 1 : index
    %c0_4 = arith.constant 0 : index
    %3 = vector.load %arg3[%c1, %c0_4] : memref<8x128xf32, #tpu.memory_space<vmem>>, vector<1x4xf32>
    %c2 = arith.constant 2 : index
    %c0_5 = arith.constant 0 : index
    %4 = vector.load %arg3[%c2, %c0_5] : memref<8x128xf32, #tpu.memory_space<vmem>>, vector<1x4xf32>
    %c3 = arith.constant 3 : index
    %c0_6 = arith.constant 0 : index
    %5 = vector.load %arg3[%c3, %c0_6] : memref<8x128xf32, #tpu.memory_space<vmem>>, vector<1x1xf32>
    %c0_7 = arith.constant 0 : index
    %c0_8 = arith.constant 0 : index
    %6 = vector.load %arg2[%c0_7, %c0_8] : memref<32x8xf32, #tpu.memory_space<vmem>>, vector<32x8xf32>
    %cst = arith.constant dense<0.000000e+00> : vector<8x8xf32>
    %7 = tpu.matmul %1, %6, %cst {dimension_numbers = #tpu.dot_dimension_numbers<[1], [0], [0], [1], [0, 0, 1, 1], [], []>} : vector<8x32xf32>, vector<32x8xf32>, vector<8x8xf32> -> vector<8x8xf32>
    %8 = vector.broadcast %2 : vector<1x8xf32> to vector<8x8xf32>
    %9 = arith.addf %7, %8 : vector<8x8xf32>
    %10 = vector.shape_cast %9 : vector<8x8xf32> to vector<1x8x8xf32>
    %11 = vector.extract_strided_slice %10 {offsets = [0, 0, 0], sizes = [1, 8, 4], strides = [1, 1, 1]} : vector<1x8x8xf32> to vector<1x8x4xf32>
    %12 = vector.extract_strided_slice %10 {offsets = [0, 0, 4], sizes = [1, 8, 4], strides = [1, 1, 1]} : vector<1x8x8xf32> to vector<1x8x4xf32>
    %cst_9 = arith.constant dense<0xFF800000> : vector<1x4xf32>
    %13 = vector.multi_reduction <maximumf>, %11, %cst_9 [1] : vector<1x8x4xf32> to vector<1x4xf32>
    %14 = vector.shape_cast %13 : vector<1x4xf32> to vector<1x1x4xf32>
    %15 = vector.shape_cast %3 : vector<1x4xf32> to vector<1x1x4xf32>
    %16 = arith.maximumf %14, %15 : vector<1x1x4xf32>
    %17 = vector.broadcast %16 : vector<1x1x4xf32> to vector<1x8x4xf32>
    %18 = arith.subf %11, %17 : vector<1x8x4xf32>
    %19 = math.exp %18 : vector<1x8x4xf32>
    %20 = vector.shape_cast %3 : vector<1x4xf32> to vector<1x1x4xf32>
    %21 = arith.subf %20, %16 : vector<1x1x4xf32>
    %22 = math.exp %21 : vector<1x1x4xf32>
    %cst_10 = arith.constant dense<0.000000e+00> : vector<1x4xf32>
    %23 = vector.multi_reduction <add>, %19, %cst_10 [1] : vector<1x8x4xf32> to vector<1x4xf32>
    %24 = vector.shape_cast %23 : vector<1x4xf32> to vector<1x1x4xf32>
    %25 = arith.addf %22, %24 : vector<1x1x4xf32>
    %26 = vector.shape_cast %4 : vector<1x4xf32> to vector<1x1x4xf32>
    %27 = arith.mulf %22, %26 : vector<1x1x4xf32>
    %28 = arith.mulf %19, %12 : vector<1x8x4xf32>
    %cst_11 = arith.constant dense<0.000000e+00> : vector<1x4xf32>
    %29 = vector.multi_reduction <add>, %28, %cst_11 [1] : vector<1x8x4xf32> to vector<1x4xf32>
    %30 = vector.shape_cast %29 : vector<1x4xf32> to vector<1x1x4xf32>
    %31 = arith.addf %27, %30 : vector<1x1x4xf32>
    %32 = tpu.reciprocal %25 : vector<1x1x4xf32> -> vector<1x1x4xf32>
    %33 = arith.mulf %31, %32 : vector<1x1x4xf32>
    %cst_12 = arith.constant dense<0.000000e+00> : vector<1x1xf32>
    %34 = vector.multi_reduction <add>, %33, %cst_12 [2] : vector<1x1x4xf32> to vector<1x1xf32>
    %35 = arith.addf %34, %5 : vector<1x1xf32>
    %36 = vector.shape_cast %35 : vector<1x1xf32> to vector<1x1x1xf32>
    %37 = vector.shape_cast %36 : vector<1x1x1xf32> to vector<1x1x1xf32>
    %38 = vector.broadcast %37 : vector<1x1x1xf32> to vector<1x1x128xf32>
    %c0_13 = arith.constant 0 : index
    %c0_14 = arith.constant 0 : index
    %c0_15 = arith.constant 0 : index
    %39 = vector.load %arg4[%c0_13, %c0_14, %c0_15] : memref<1x1x128xf32, #tpu.memory_space<vmem>>, vector<1x1x128xf32>
    tpu.vector_store %arg4[%c0_13, %c0_14, %c0_15], %38 {strides = array<i32>} : memref<1x1x128xf32, #tpu.memory_space<vmem>>, vector<1x1x128xf32>,
    return
  }
  func.func @transform_0(%arg0: i32) -> (i32, i32, i32) {
    %c0_i32 = arith.constant 0 : i32
    %c0_i32_0 = arith.constant 0 : i32
    %c0_i32_1 = arith.constant 0 : i32
    return %arg0, %c0_i32, %c0_i32_0 : i32, i32, i32
  }
  func.func @transform_1(%arg0: i32) -> (i32, i32) {
    %c0_i32 = arith.constant 0 : i32
    %c0_i32_0 = arith.constant 0 : i32
    %c0_i32_1 = arith.constant 0 : i32
    return %c0_i32, %c0_i32_0 : i32, i32
  }
  func.func @transform_2(%arg0: i32) -> (i32, i32) {
    %c0_i32 = arith.constant 0 : i32
    %c0_i32_0 = arith.constant 0 : i32
    %c0_i32_1 = arith.constant 0 : i32
    return %c0_i32, %c0_i32_0 : i32, i32
  }
  func.func @transform_3(%arg0: i32) -> (i32, i32, i32) {
    %c0_i32 = arith.constant 0 : i32
    %c0_i32_0 = arith.constant 0 : i32
    %c0_i32_1 = arith.constant 0 : i32
    return %arg0, %c0_i32, %c0_i32_0 : i32, i32, i32
  }
}

</mosaic_0001>

<bundles_post_ra>
// kernel: tpu_custom_call.1
= control target key start
LH: loop header
LB: loop body
LE: loop exit
PB: predicated region body
PF: predicated region fallthrough
CT: control target
= control target key end

     0   :  { %8 = vsyncpa [#allocation3], 0  ;;  %s587_s0 = inlined_call_operand.vmem [shape: f32[2,8,32], index: 0, kind: input, shape index: {}]   ;;  %s588_s1 = inlined_call_operand.vmem [shape: f32[32,8], index: 1, kind: input, shape index: {}]   ;;  %s589_s2 = inlined_call_operand.vmem [shape: f32[8,128], index: 2, kind: input, shape index: {}]   ;;  %s590_s3 = inlined_call_operand.hbm [shape: f32[2,1,128], index: 3, kind: output, shape index: {}]  }
   0x1   :  { %10 = vsyncpa [#allocation3 + $0x1], 0  ;;  %s475_s12 = smov 0   ;;  %s477_s13 = smov 0  }
   0x2   :  { %s479_s14 = smov 0   ;;  %s481_s15 = smov 0  }
   0x3 LB: > { %s496_s16 = sadd.s32 4294967295, %s451_s15   ;;  %s331_s17 = sadd.s32 4294967294, %s451_s15   ;;  %s451_s15 = sphi %s481_s15, %s596_s15   ;;  %s447_s14 = sphi %s479_s14, %s595_s14   ;;  %s443_s13 = sphi %s477_s13, %s594_s13   ;;  %s439_s12 = sphi %s475_s12, %s593_s12  }
   0x4   : > { %s500_s18 = sadd.s32 1, %s451_s15   ;;  %s91_s19 = sadd.s32 1, %s447_s14 }
   0x5   : > { %s88_s20 = ssub.s32 %s451_s15, %s500_s18  ;;  %p101_p0 = scmp.ne.s32.totalorder %s447_s14, %s443_s13 }
   0x6   : > { %p89_p1 = scmp.eq.s32.totalorder %s88_s20, 0  ;;  %p102_p2 = scmp.eq.s32.totalorder %s496_s16, 1 }
   0x7   : > { %p107_p3 = scmp.ne.s32.totalorder %s443_s13, %s439_s12  ;;  %p108_p4 = scmp.eq.s32.totalorder %s331_s17, 1 }
   0x8   : > { %s511_s21 = scalar_select %p89_p1, %s447_s14, %s91_s19  }
   0x9   : > { %p513_p5 = por %p102_p2, %p101_p0  ;;  %p517_p6 = por %p108_p4, %p107_p3 }
   0xa   : > { %p334_p7 = scmp.ge.s32.totalorder %s451_s15, 1  ;;  %p139_p8 = scmp.lt.s32.totalorder %s451_s15, 3 }
   0xc   : > { %p140_p9 = pnand %p334_p7, %p139_p8 }
   0xd   : > { %p161_p10 = scmp.lt.s32.totalorder (!%p140_p9), %s496_s16, 1  ;;  %s453_s17 = smov (!%p140_p9), 124  }
   0xe   : > { %143 = sbr.rel (%p140_p9) target bundleno = 526 (0x20e), region = 32  ;;  %s159_s28 = sand.u32 (!%p140_p9), 1, %s443_s13  }
   0xf   : > { %s272_s4 = scalar_lea.hbm (!%p140_p9), %s590_s3, %s496_s16  ;;  %s160_s5 = scalar_lea.vmem (!%p140_p9), [#allocation2], %s159_s28 }
  0x10   : > { %s276_s7 = sshll.u32 (!%p140_p9), %s272_s4, 4  ;;  %s264_s8 = scalar_lea.sflag (!%p140_p9), [#allocation3], %s159_s28  ;;  %s277_s7 = int_to_ptr.hbm [resolvable:$true] %s276_s7 }
  0x11   : > { %s409_s19 = scalar_lea.hbm (!%p140_p9), %s590_s3, 2 }
  0x13   : > { %v173_v0 = vld [vmem:[%s588_s1 + $0x18] sm:$0xff]  ;;  %v172_v1 = vld [vmem:[%s588_s1 + $0x10] sm:$0xff]  ;;  %v171_v2 = vld [vmem:[%s588_s1 + $0x8] sm:$0xff]  ;;  %s162_s30 = scalar_select %p161_p10, %s496_s16, 1  ;;  %vm175_vm0 = vcmask 261120   ;;  %vm199_vm1 = vcmask 31744  }
  0x14   : > { %191 = vmatpush.msra.mxu0 %v173_v0  ;;  %v170_v3 = vld [vmem:[%s588_s1] sm:$0xff]  ;;  %vm252_vm6 = vcmask 24576   ;;  %v454_v56 = vmov 0  }
  0x15   : > { %s335_s6 = sshll.u32 %s162_s30, 3  ;;  %v382_v5 = vld [vmem:[%s589_s2] ss:$0 sm:$0xff]  ;;  %v167_v15 = vld [vmem:[%s589_s2 + $0x1] sm:$0x1]  ;;  %380 = vset.pattern.permute.xlu1 %v454_v56  ;;  %381 = vset.pattern.permute.xlu0 %v454_v56 }
  0x16   : > { %192 = vmatpush.msra.mxu0 %v172_v1  ;;  %s164_s9 = scalar_lea.vmem %s587_s0, %s335_s6  ;;  %v168_v44 = vld [vmem:[%s589_s2 + $0x2] sm:$0x1]  ;;  %v169_v57 = vld [vmem:[%s589_s2 + $0x3] sm:$0x1]  ;;  %s274_s6 = sshll.u32 %s160_s5, 4  ;;  %s275_s6 = int_to_ptr.vmem [resolvable:$true] %s274_s6 }
  0x17   : > { %v165_v4 = vld [vmem:[%s164_s9] sm:$0xff]  ;;  %s403_s9 = sshra.s32 %s277_s7, 4  ;;  %s404_s9 = int_to_ptr.hbm [resolvable:$true] %s403_s9 }
  0x18   : > { %193 = vmatpush.msra.mxu0 %v171_v2  ;;  %s405_s10 = scalar_lea.hbm %s404_s9, 1  ;;  %p410_p0 = scmp.lt.s32.totalorder %s404_s9, %s590_s3 }
  0x19   : > { %p406_p11 = scmp.ne.s32.totalorder %s404_s9, %s405_s10  ;;  %p411_p1 = scmp.lt.s32.totalorder %s409_s19, %s405_s10 }
  0x1a   : > { %194 = vmatpush.msra.mxu0 %v170_v3 }
  0x1b   : > { %336 = vmatmul.msk.f32.vlgmr.msra.gmra.mxu0 %vm175_vm0, %v165_v4  ;;  %p407_p12 = pnand %p406_p11, %p513_p5  ;;  %p412_p2 = por %p411_p1, %p410_p0 }
  0x1d   : > { %p408_p13 = pneg %p407_p12 }
  0x1f   : > { %p413_p3 = pnand %p412_p2, %p408_p13 }
  0x98   : > { %v196_v6 = vpop.f32.mrf.mxu0 }
  0x99   : > { %v197_v7 = vadd.f32 %v382_v5, %v196_v6 }
  0x9b   : > { %225 = vrot.lane.b32.xlu0 %v197_v7, %s453_s17  ;;  %v200_v8 = vsel %vm199_vm1, %v197_v7, -inf }
  0x9c   : > { %v201_v9 = vrot.slane %v200_v8, 4 }
  0x9e   : > { %v202_v10 = vmax.f32 %v200_v8, %v201_v9 }
  0xa0   : > { %v203_v11 = vrot.slane %v202_v10, 2 }
  0xa2   : > { %v204_v12 = vmax.f32 %v202_v10, %v203_v11 }
  0xa4   : > { %v205_v13 = vrot.slane %v204_v12, 1 }
  0xa6   : > { %v206_v14 = vmax.f32 %v204_v12, %v205_v13 }
  0xa8   : > { %v207_v16 = vmax.f32 %v206_v14, %v167_v15 }
  0xaa   : > { %v208_v17 = vperm.slane %v207_v16, 0  ;;  %v212_v25 = vsub.f32 %v167_v15, %v207_v16 }
  0xac   : > { %v209_v18 = vsub.f32 %v197_v7, %v208_v17  ;;  %v213_v27 = vmul.f32 1.442695, %v212_v25 }
  0xae   : > { %v210_v19 = vmul.f32 1.442695, %v209_v18 }
  0xb0   : > { %383 = vpow2.f32 %v210_v19 }
  0xb1   : > { %385 = vpow2.f32 %v213_v27 }
  0xb6   : > { %v384_v20 = vpop.eup %383 }
  0xb7   : > { %v215_v21 = vsel %vm199_vm1, %v384_v20, 0.0  ;;  %v386_v30 = vpop.eup %385 }
  0xb8   : > { %v216_v22 = vrot.slane %v215_v21, 4  ;;  %v223_v48 = vmul.f32 %v386_v30, %v168_v44 }
  0xba   : > { %v217_v23 = vadd.f32 %v216_v22, %v215_v21 }
  0xbc   : > { %v218_v24 = vrot.slane %v217_v23, 2 }
  0xbe   : > { %v219_v26 = vadd.f32 %v218_v24, %v217_v23 }
  0xc0   : > { %v220_v28 = vrot.slane %v219_v26, 1 }
  0xc2   : > { %v221_v29 = vadd.f32 %v220_v28, %v219_v26 }
  0xc4   : > { %v222_v31 = vadd.f32 %v386_v30, %v221_v29 }
  0xc6   : > { %387 = vrcp.f32 %v222_v31  ;;  %v248_v45 = vand.u32 2147483648, %v222_v31  ;;  %vm242_vm3 = vweird.f32 %v222_v31  ;;  %v246_v47 = vand.u32 2147483647, %v222_v31 }
  0xc8   : > { %v249_v51 = vor.u32 1.1754944e-38, %v248_v45  ;;  %vm247_vm5 = vcmp.eq.f32.partialorder %v246_v47, 8.507059e+37 }
  0xcc   : > { %v388_v32 = vpop.eup %387 }
  0xcd   : > { %v238_v33 = vmul.f32 %v388_v32, %v222_v31  ;;  %vm243_vm2 = vweird.f32 %v388_v32 }
  0xce   : > { %vm244_vm4 = vmor %vm242_vm3, %vm243_vm2 }
  0xcf   : > { %v239_v36 = vsub.f32 1.0, %v238_v33 }
  0xd1   : > { %v240_v40 = vmul.f32 %v388_v32, %v239_v36 }
  0xd3   : > { %v241_v43 = vadd.f32 %v388_v32, %v240_v40 }
  0xd5   : > { %v245_v50 = vsel %vm244_vm4, %v388_v32, %v241_v43 }
  0xd6   : > { %v250_v53 = vsel %vm247_vm5, %v249_v51, %v245_v50 }
 0x10d   : > { %v226_v34 = vpop.permute.xlu0 %225 }
 0x10e   : > { %v228_v35 = vmul.f32 %v384_v20, %v226_v34 }
 0x110   : > { %v229_v37 = vsel %vm199_vm1, %v228_v35, 0.0 }
 0x111   : > { %v230_v38 = vrot.slane %v229_v37, 4 }
 0x113   : > { %v231_v39 = vadd.f32 %v230_v38, %v229_v37 }
 0x115   : > { %v232_v41 = vrot.slane %v231_v39, 2 }
 0x117   : > { %v233_v42 = vadd.f32 %v232_v41, %v231_v39 }
 0x119   : > { %v234_v46 = vrot.slane %v233_v42, 1 }
 0x11b   : > { %v235_v49 = vadd.f32 %v234_v46, %v233_v42 }
 0x11d   : > { %v236_v52 = vadd.f32 %v235_v49, %v223_v48 }
 0x11f   : > { %v251_v54 = vmul.f32 %v250_v53, %v236_v52 }
 0x121   : > { %v253_v55 = vsel %vm252_vm6, %v251_v54, 0.0 }
 0x122   : > { %254 = vadd.xlane.f32.xlu0 %v253_v55 }
 0x195   : > { %v255_v58 = vpop.xlane.xlu0 %254 }
 0x196   : > { %v256_v59 = vadd.f32 %v255_v58, %v169_v57 }
 0x198   : > { %259 = vperm.xlu1 %380, %v256_v59  }
 0x20a   : > { %v260_v60 = vpop.permute.xlu1 %259 }
 0x20b   : > { %262 = vst [vmem:[%s160_s5] sm:$0x1] %v260_v60 }
 0x20c   : > { %416 = shalt.err (!%p413_p3)
}
 0x20d   : > { %339 = dma.vmem_to_hbm [thread:$0]  (%p513_p5), %s275_s6, 16, %s277_s7, %s264_s8  }
 0x20e PF: > { %p345_p4 = scmp.ge.s32.totalorder %s451_s15, 2  ;;  %s288_s24 = sand.u32 1, %s439_s12  }
 0x20f   : > { %s289_s25 = scalar_lea.sflag [#allocation3], %s288_s24 }
 0x210   : > { %p342_p7 = pnand %p345_p4, %p517_p6 }
 0x212   : > { %p343_p8 = pneg %p342_p7 }
 0x214   : > { %434 = dma.done.wait (%p343_p8), %s289_s25, 16  }
 0x215   : > { %436 = vsyncadd (%p343_p8), %s289_s25, 4294967280  ;;  %p13_p9 = scmp.ge.s32.totalorder %s500_s18, 4   ;;  %s593_s12 = smov %s443_s13 }
 0x216   : > { %s594_s13 = smov %s447_s14  ;;  %s595_s14 = smov %s511_s21 }
 0x217   : > { %s596_s15 = smov %s500_s18  ;;  %15 = sbr.rel (!%p13_p9) target bundleno = 3 (0x3), region = 67 }
 0x21c   :  { %294 = vsyncpa [#allocation3], 1 }
 0x21d   :  { %296 = vsyncpa [#allocation3 + $0x1], 1 }

</bundles_post_ra>
